<compile_context>
chip_gen: v7x
topology: tpu7x:2x2x1
jax: 0.10.0
libtpu: 0.0.40
codegen_flags: <defaults>
</compile_context>

<pallas_src>
import jax
import jax.numpy as jnp
from jax import lax
from jax.experimental import pallas as pl
from jax.experimental.pallas import tpu as pltpu

# ---- constants mirroring const.repn.PROJECTION / const.N_RELATIONS (synthetic, small) ----
PROJECTION = 32
N_RELATIONS = 8
NEG_SLOPE = 0.2          # GATConv default negative_slope

N_OBJ = 16               # object nodes per graph
N_REL = 8                # relation nodes per graph
N_TOT = N_OBJ + N_REL

MASK_BIAS = 1e30         # additive bias for non-edges (exp underflows to exactly 0)
MAX_FLOOR = 1e20         # row-max floor: rows with zero in-edges -> alpha == 0 -> output = bias

# Packed weight slab column layout (see pack_params):
#   [ 0: 8]  W_skip      (object->object; PyG GATConv(int) shares lin for src/dst)
#   [ 8:16]  W_o2r_src   (object source projection of the object->relation conv)
#   [16:24]  W_r2o_src   (relation source projection of the relation->object conv)
#   [24] v_skip_src  [25] v_skip_dst  [26] v_o2r_src  [27] v_o2r_dst  [28] v_r2o_src  [29] v_r2o_dst
#   [30:32] zero pad
W_COLS = 32


# ----------------------------- fused Pallas kernel -----------------------------

def _edge_softmax_agg(a_dst, a_src, adj_bias, h_src):
    """Dense masked GAT edge-softmax + aggregation for one relation type.

    a_dst   : [Nd, 1]  folded destination attention scalars (x_dst @ (W_dst @ att_dst^T))
    a_src   : [Ns, 1]  folded source attention scalars
    adj_bias: [Nd, Ns] 0.0 where an edge src->dst exists, -MASK_BIAS otherwise
    h_src   : [Ns, Fo] projected source features (f32)
    """
    # e[i, j] = a_dst[i] + a_src[j] via one tiny MXU push (no transpose / XLU reduce needed)
    dst_aug = jnp.concatenate([a_dst, jnp.ones_like(a_dst)], axis=1)      # [Nd, 2]
    src_aug = jnp.concatenate([jnp.ones_like(a_src), a_src], axis=1)      # [Ns, 2]
    e = lax.dot_general(dst_aug, src_aug, (((1,), (1,)), ((), ())),
                        preferred_element_type=jnp.float32)               # [Nd, Ns]
    e = jnp.where(e > 0, e, NEG_SLOPE * e)                                # LeakyReLU(0.2)
    e = e + adj_bias                                                      # single additive mask
    m = jnp.maximum(jnp.max(e, axis=-1, keepdims=True), -MAX_FLOOR)
    p = jnp.exp(e - m)                                                    # non-edges underflow to 0
    denom = jnp.maximum(jnp.sum(p, axis=-1, keepdims=True), 1e-12)
    alpha = p * pl.reciprocal(denom, approx=True)                         # EUP; frees VPU slots
    return jnp.dot(alpha, h_src, preferred_element_type=jnp.float32)      # [Nd, Fo]


def agcn_fused_kernel(x_ref, w_ref, b_ref,
                      adjb_skip_ref, adjb_o2r_ref, adjb_r2o_ref, out_ref):
    """One graph per grid step: 3 GATConvs + HeteroConv(sum) + relation softmax, fully fused.

    x_ref   : [1, N_TOT, 32] bf16   (object rows 0:16, relation rows 16:24)
    w_ref   : [32, 32]       bf16   packed projections + folded attention vectors
    b_ref   : [2, 8]         f32    row 0 = b_skip + b_r2o (object dst), row 1 = b_o2r (relation dst)
    adjb_*  : dense additive edge masks (0 / -1e30)
    out_ref : [1, N_TOT, 8]  f32    rows 0:16 = object_out, rows 16:24 = relation softmax logits
    """
    # One packed projection for all three GATConvs (MXU, f32 accumulation).
    h = jnp.dot(x_ref[0], w_ref[...], preferred_element_type=jnp.float32)  # [N_TOT, 32]
    h_obj = h[:N_OBJ]                                                      # [16, 32]
    h_rel = h[N_OBJ:]                                                      # [8, 32]

    h_skip = h_obj[:, 0:8]          # projected object sources, skip conv
    h_o2r = h_obj[:, 8:16]          # projected object sources, object->relation conv
    h_r2o = h_rel[:, 16:24]         # projected relation sources, relation->object conv

    a_skip_src = h_obj[:, 24:25]
    a_skip_dst = h_obj[:, 25:26]
    a_o2r_src = h_obj[:, 26:27]
    a_o2r_dst = h_rel[:, 27:28]
    a_r2o_src = h_rel[:, 28:29]
    a_r2o_dst = h_obj[:, 29:30]

    out_skip = _edge_softmax_agg(a_skip_dst, a_skip_src, adjb_skip_ref[0], h_skip)  # [16, 8]
    out_o2r = _edge_softmax_agg(a_o2r_dst, a_o2r_src, adjb_o2r_ref[0], h_o2r)       # [8, 8]
    out_r2o = _edge_softmax_agg(a_r2o_dst, a_r2o_src, adjb_r2o_ref[0], h_r2o)       # [16, 8]

    # HeteroConv(aggr='sum'): 'object' dst = skip + r2o (each conv adds its own bias).
    object_out = out_skip + out_r2o + b_ref[0:1, :]
    # 'relation' dst = o2r only, then nn.Softmax(dim=1).
    rel = out_o2r + b_ref[1:2, :]
    m = jnp.max(rel, axis=-1, keepdims=True)
    p = jnp.exp(rel - m)
    logits = p * pl.reciprocal(jnp.sum(p, axis=-1, keepdims=True), approx=True)

    out_ref[0, :N_OBJ, :] = object_out
    out_ref[0, N_OBJ:, :] = logits


# ----------------------------- wrappers -----------------------------

def _fold(w, att):
    """Fold attention vector into projection: x @ (w @ att^T) == (x @ w) @ att^T.  -> [Fin, 1]"""
    return jnp.dot(w, att.T, precision=lax.Precision.HIGHEST)


def pack_params(params):
    ps, po, pr = params['skip'], params['o2r'], params['r2o']
    w_comb = jnp.concatenate([
        ps['w_src'],                          # 0:8   W_skip (shared lin)
        po['w_src'],                          # 8:16  W_o2r_src
        pr['w_src'],                          # 16:24 W_r2o_src
        _fold(ps['w_src'], ps['att_src']),    # 24
        _fold(ps['w_dst'], ps['att_dst']),    # 25
        _fold(po['w_src'], po['att_src']),    # 26
        _fold(po['w_dst'], po['att_dst']),    # 27
        _fold(pr['w_src'], pr['att_src']),    # 28
        _fold(pr['w_dst'], pr['att_dst']),    # 29
        jnp.zeros((PROJECTION, W_COLS - 30), jnp.float32),   # 30:32 pad (keep slab 32 lanes wide)
    ], axis=1)
    # HeteroConv(aggr='sum'): object dst bias = b_skip + b_r2o ; relation dst bias = b_o2r
    b_comb = jnp.concatenate([ps['bias'] + pr['bias'], po['bias']], axis=0)  # [2, 8]
    return w_comb.astype(jnp.bfloat16), b_comb.astype(jnp.float32)


@jax.jit
def agcn_batched(x_all, w_comb, b_comb, adjb_skip, adjb_o2r, adjb_r2o):
    g = x_all.shape[0]
    grid_spec = pltpu.PrefetchScalarGridSpec(
        num_scalar_prefetch=0,
        grid=(g,),
        in_specs=[
            pl.BlockSpec((1, N_TOT, PROJECTION), lambda i: (i, 0, 0)),   # x (bf16)
            pl.BlockSpec((PROJECTION, W_COLS), lambda i: (0, 0)),        # packed weights (resident)
            pl.BlockSpec((2, N_RELATIONS), lambda i: (0, 0)),            # packed biases
            pl.BlockSpec((1, N_OBJ, N_OBJ), lambda i: (i, 0, 0)),        # adj bias skip
            pl.BlockSpec((1, N_REL, N_OBJ), lambda i: (i, 0, 0)),        # adj bias o2r
            pl.BlockSpec((1, N_OBJ, N_REL), lambda i: (i, 0, 0)),        # adj bias r2o
        ],
        out_specs=pl.BlockSpec((1, N_TOT, N_RELATIONS), lambda i: (i, 0, 0)),
    )
    return pl.pallas_call(
        agcn_fused_kernel,
        out_shape=jax.ShapeDtypeStruct((g, N_TOT, N_RELATIONS), jnp.float32),
        grid_spec=grid_spec,
        compiler_params=pltpu.CompilerParams(dimension_semantics=("parallel",)),
    )(x_all, w_comb, b_comb, adjb_skip, adjb_o2r, adjb_r2o)


def agcn_forward(params, graphs):
    # TODO(synk): real HeteroData graphs with varying node counts would need padding to a common
    # (N_OBJ, N_REL) before batching; the synthetic graphs here all share the same sizes.
    x_all = jnp.stack([
        jnp.concatenate([g['object_features'], g['relation_features']], axis=0) for g in graphs
    ]).astype(jnp.bfloat16)                                              # [G, 24, 32]
    adjb_skip = jnp.stack([g['adjb_skip'] for g in graphs])              # [G, 16, 16]
    adjb_o2r = jnp.stack([g['adjb_o2r'] for g in graphs])                # [G, 8, 16]
    adjb_r2o = jnp.stack([g['adjb_r2o'] for g in graphs])                # [G, 16, 8]

    w_comb, b_comb = pack_params(params)
    out = agcn_batched(x_all, w_comb, b_comb, adjb_skip, adjb_o2r, adjb_r2o)  # [G, 24, 8]

    predictions = []
    for gi in range(len(graphs)):
        predictions.append({
            'relation_logits': out[gi, N_OBJ:, :],   # nn.Softmax(dim=1) of x['relation']
            'object_out': out[gi, :N_OBJ, :],        # HeteroConv sum for 'object' dst (fidelity)
        })
    return predictions


# ----------------------------- params & data -----------------------------

def init_gat_params(key, f_in, f_out, shared_lin=False):
    k1, k2, k3, k4 = jax.random.split(key, 4)
    scale = 1.0 / jnp.sqrt(jnp.float32(f_in))
    w_src = jax.random.normal(k1, (f_in, f_out), jnp.float32) * scale
    w_dst = w_src if shared_lin else jax.random.normal(k2, (f_in, f_out), jnp.float32) * scale
    att_src = jax.random.normal(k3, (1, f_out), jnp.float32) * scale
    att_dst = jax.random.normal(k4, (1, f_out), jnp.float32) * scale
    bias = jnp.zeros((1, f_out), jnp.float32)
    return dict(w_src=w_src, w_dst=w_dst, att_src=att_src, att_dst=att_dst, bias=bias)


def init_agcn_params(key):
    k1, k2, k3 = jax.random.split(key, 3)
    return {
        'skip': init_gat_params(k1, PROJECTION, N_RELATIONS, shared_lin=True),
        'o2r': init_gat_params(k2, PROJECTION, N_RELATIONS, shared_lin=False),
        'r2o': init_gat_params(k3, PROJECTION, N_RELATIONS, shared_lin=False),
    }


def edges_to_adj_bias(edge_index, n_src, n_dst):
    # TODO(synk): densification dedupes parallel edges; PyG's sparse edge-softmax counts duplicates.
    src, dst = edge_index
    b = jnp.full((n_dst, n_src), -MASK_BIAS, jnp.float32)
    return b.at[dst, src].set(0.0)


# ----------------------------- pure-JAX reference -----------------------------

def _bf16_round(a):
    return a.astype(jnp.bfloat16).astype(jnp.float32)


def ref_gat(x_src, x_dst, w_src, v_src, v_dst, bias, adj_mask):
    h_s = jnp.dot(x_src, w_src, precision=lax.Precision.HIGHEST)   # [Ns, Fo]
    a_s = jnp.dot(x_src, v_src, precision=lax.Precision.HIGHEST)   # [Ns, 1]
    a_d = jnp.dot(x_dst, v_dst, precision=lax.Precision.HIGHEST)   # [Nd, 1]
    e = a_d + a_s.T
    e = jnp.where(e > 0, e, NEG_SLOPE * e)
    e = jnp.where(adj_mask, e, -MASK_BIAS)
    m = jnp.maximum(jnp.max(e, axis=-1, keepdims=True), -MAX_FLOOR)
    p = jnp.where(adj_mask, jnp.exp(e - m), 0.0)
    denom = jnp.maximum(jnp.sum(p, axis=-1, keepdims=True), 1e-12)
    alpha = p / denom
    return jnp.dot(alpha, h_s, precision=lax.Precision.HIGHEST) + bias


def ref_forward(params, graphs):
    ps, po, pr = params['skip'], params['o2r'], params['r2o']
    preds = []
    for g in graphs:
        xo, xr = _bf16_round(g['object_features']), _bf16_round(g['relation_features'])
        m_skip, m_o2r, m_r2o = (g['adjb_skip'] == 0.0, g['adjb_o2r'] == 0.0, g['adjb_r2o'] == 0.0)
        out_skip = ref_gat(xo, xo, _bf16_round(ps['w_src']),
                           _bf16_round(_fold(ps['w_src'], ps['att_src'])),
                           _bf16_round(_fold(ps['w_dst'], ps['att_dst'])), ps['bias'], m_skip)
        out_o2r = ref_gat(xo, xr, _bf16_round(po['w_src']),
                          _bf16_round(_fold(po['w_src'], po['att_src'])),
                          _bf16_round(_fold(po['w_dst'], po['att_dst'])), po['bias'], m_o2r)
        out_r2o = ref_gat(xr, xo, _bf16_round(pr['w_src']),
                          _bf16_round(_fold(pr['w_src'], pr['att_src'])),
                          _bf16_round(_fold(pr['w_dst'], pr['att_dst'])), pr['bias'], m_r2o)
        preds.append({'relation_logits': jax.nn.softmax(out_o2r, axis=1),
                      'object_out': out_skip + out_r2o})
    return preds


# ----------------------------- main -----------------------------

if __name__ == "__main__":
    key = jax.random.PRNGKey(0)
    k_params, k_data = jax.random.split(key)
    params = init_agcn_params(k_params)

    N_GRAPHS = 2
    graphs = []
    for gi in range(N_GRAPHS):
        kg = jax.random.fold_in(k_data, gi)
        kf1, kf2, ke1, ke2, ke3, ke4, ke5, ke6 = jax.random.split(kg, 8)

        x_obj = jax.random.normal(kf1, (N_OBJ, PROJECTION), jnp.float32)
        x_rel = jax.random.normal(kf2, (N_REL, PROJECTION), jnp.float32)

        skip_ei = jnp.stack([jax.random.randint(ke1, (32,), 0, N_OBJ),
                             jax.random.randint(ke2, (32,), 0, N_OBJ)])
        o2r_ei = jnp.stack([jax.random.randint(ke3, (24,), 0, N_OBJ),
                            jax.random.randint(ke4, (24,), 0, N_REL)])
        r2o_ei = jnp.stack([jax.random.randint(ke5, (24,), 0, N_REL),
                            jax.random.randint(ke6, (24,), 0, N_OBJ)])

        graphs.append({
            'object_features': x_obj,
            'relation_features': x_rel,
            'adjb_skip': edges_to_adj_bias(skip_ei, N_OBJ, N_OBJ),   # [16, 16]
            'adjb_o2r': edges_to_adj_bias(o2r_ei, N_OBJ, N_REL),     # [8, 16]
            'adjb_r2o': edges_to_adj_bias(r2o_ei, N_REL, N_OBJ),     # [16, 8]
        })

    preds = agcn_forward(params, graphs)
    for p in preds:
        jax.block_until_ready(p['relation_logits'])
        jax.block_until_ready(p['object_out'])

    # correctness: compare against a pure-JAX dense masked GAT reference on the same
    # bf16-rounded operands (loose tolerance covers approx reciprocal + accumulation order)
    refs = ref_forward(params, graphs)
    for p, r in zip(preds, refs):
        assert bool(jnp.allclose(p['relation_logits'], r['relation_logits'], atol=5e-2, rtol=5e-2))
        assert bool(jnp.allclose(p['object_out'], r['object_out'], atol=5e-2, rtol=5e-2))
        s = jnp.sum(p['relation_logits'], axis=1)
        assert bool(jnp.all(jnp.abs(s - 1.0) < 1e-2))   # softmax rows sum to ~1 (approx reciprocal)

    print("KERNEL_OK")
</pallas_src>

<mosaic_0001>
module attributes {stable_mosaic.version = 11 : i64} {
  func.func @agcn_fused_kernel(%arg0: i32, %arg1: memref<1x24x32xbf16, #tpu.memory_space<vmem>>, %arg2: memref<32x32xbf16, #tpu.memory_space<vmem>>, %arg3: memref<2x8xf32, #tpu.memory_space<vmem>>, %arg4: memref<1x16x16xf32, #tpu.memory_space<vmem>>, %arg5: memref<1x8x16xf32, #tpu.memory_space<vmem>>, %arg6: memref<1x16x8xf32, #tpu.memory_space<vmem>>, %arg7: memref<1x24x8xf32, #tpu.memory_space<vmem>>) attributes {dimension_semantics = [#tpu.dimension_semantics<parallel>], iteration_bounds = array<i64: 2>, scalar_prefetch = 0 : i64, scratch_operands = 0 : i64, tpu.core_type = #tpu.core_type<tc>, window_params = [{transform_indices = @transform_0, window_bounds = array<i64: 1, 24, 32>}, {pipeline_mode = #tpu.pipeline_mode<synchronous>, transform_indices = @transform_1, window_bounds = array<i64: 32, 32>}, {pipeline_mode = #tpu.pipeline_mode<synchronous>, transform_indices = @transform_2, window_bounds = array<i64: 2, 8>}, {transform_indices = @transform_3, window_bounds = array<i64: 1, 16, 16>}, {transform_indices = @transform_4, window_bounds = array<i64: 1, 8, 16>}, {transform_indices = @transform_5, window_bounds = array<i64: 1, 16, 8>}, {transform_indices = @transform_6, window_bounds = array<i64: 1, 24, 8>}]} {
    %c0 = arith.constant 0 : index
    %c0_0 = arith.constant 0 : index
    %c0_1 = arith.constant 0 : index
    %0 = vector.load %arg1[%c0, %c0_0, %c0_1] : memref<1x24x32xbf16, #tpu.memory_space<vmem>>, vector<1x24x32xbf16>
    %1 = vector.shape_cast %0 : vector<1x24x32xbf16> to vector<24x32xbf16>
    %c0_2 = arith.constant 0 : index
    %c0_3 = arith.constant 0 : index
    %2 = vector.load %arg2[%c0_2, %c0_3] : memref<32x32xbf16, #tpu.memory_space<vmem>>, vector<32x32xbf16>
    %cst = arith.constant dense<0.000000e+00> : vector<24x32xf32>
    %3 = tpu.matmul %1, %2, %cst {dimension_numbers = #tpu.dot_dimension_numbers<[1], [0], [0], [1], [0, 0, 1, 1], [], []>} : vector<24x32xbf16>, vector<32x32xbf16>, vector<24x32xf32> -> vector<24x32xf32>
    %4 = vector.extract_strided_slice %3 {offsets = [0, 0], sizes = [16, 32], strides = [1, 1]} : vector<24x32xf32> to vector<16x32xf32>
    %5 = vector.extract_strided_slice %3 {offsets = [16, 0], sizes = [8, 32], strides = [1, 1]} : vector<24x32xf32> to vector<8x32xf32>
    %6 = vector.extract_strided_slice %4 {offsets = [0, 0], sizes = [16, 8], strides = [1, 1]} : vector<16x32xf32> to vector<16x8xf32>
    %7 = vector.extract_strided_slice %4 {offsets = [0, 8], sizes = [16, 8], strides = [1, 1]} : vector<16x32xf32> to vector<16x8xf32>
    %8 = vector.extract_strided_slice %5 {offsets = [0, 16], sizes = [8, 8], strides = [1, 1]} : vector<8x32xf32> to vector<8x8xf32>
    %9 = vector.extract_strided_slice %4 {offsets = [0, 24], sizes = [16, 1], strides = [1, 1]} : vector<16x32xf32> to vector<16x1xf32>
    %10 = vector.extract_strided_slice %4 {offsets = [0, 25], sizes = [16, 1], strides = [1, 1]} : vector<16x32xf32> to vector<16x1xf32>
    %11 = vector.extract_strided_slice %4 {offsets = [0, 26], sizes = [16, 1], strides = [1, 1]} : vector<16x32xf32> to vector<16x1xf32>
    %12 = vector.extract_strided_slice %5 {offsets = [0, 27], sizes = [8, 1], strides = [1, 1]} : vector<8x32xf32> to vector<8x1xf32>
    %13 = vector.extract_strided_slice %5 {offsets = [0, 28], sizes = [8, 1], strides = [1, 1]} : vector<8x32xf32> to vector<8x1xf32>
    %14 = vector.extract_strided_slice %4 {offsets = [0, 29], sizes = [16, 1], strides = [1, 1]} : vector<16x32xf32> to vector<16x1xf32>
    %c0_4 = arith.constant 0 : index
    %c0_5 = arith.constant 0 : index
    %c0_6 = arith.constant 0 : index
    %15 = vector.load %arg4[%c0_4, %c0_5, %c0_6] : memref<1x16x16xf32, #tpu.memory_space<vmem>>, vector<1x16x16xf32>
    %16 = vector.shape_cast %15 : vector<1x16x16xf32> to vector<16x16xf32>
    %cst_7 = arith.constant 1.000000e+00 : f32
    %17 = vector.broadcast %cst_7 : f32 to vector<16x1xf32>
    %18 = tpu.concatenate %10, %17 in 1 : vector<16x1xf32>, vector<16x1xf32> -> vector<16x2xf32>
    %cst_8 = arith.constant 1.000000e+00 : f32
    %19 = vector.broadcast %cst_8 : f32 to vector<16x1xf32>
    %20 = tpu.concatenate %19, %9 in 1 : vector<16x1xf32>, vector<16x1xf32> -> vector<16x2xf32>
    %cst_9 = arith.constant dense<0.000000e+00> : vector<16x16xf32>
    %21 = tpu.matmul %18, %20, %cst_9 {dimension_numbers = #tpu.dot_dimension_numbers<[1], [1], [0], [0], [0, 0, 1, 0], [], []>} : vector<16x2xf32>, vector<16x2xf32>, vector<16x16xf32> -> vector<16x16xf32>
    %cst_10 = arith.constant 0.000000e+00 : f32
    %22 = vector.broadcast %cst_10 : f32 to vector<16x16xf32>
    %23 = arith.cmpf ogt, %21, %22 : vector<16x16xf32>
    %cst_11 = arith.constant 2.000000e-01 : f32
    %24 = vector.broadcast %cst_11 : f32 to vector<16x16xf32>
    %25 = arith.mulf %24, %21 : vector<16x16xf32>
    %26 = arith.select %23, %21, %25 : vector<16x16xi1>, vector<16x16xf32>
    %27 = arith.addf %26, %16 : vector<16x16xf32>
    %cst_12 = arith.constant dense<0xFF800000> : vector<16xf32>
    %28 = vector.multi_reduction <maximumf>, %27, %cst_12 [1] : vector<16x16xf32> to vector<16xf32>
    %29 = vector.shape_cast %28 : vector<16xf32> to vector<16x1xf32>
    %cst_13 = arith.constant -1.000000e+20 : f32
    %30 = vector.broadcast %cst_13 : f32 to vector<16x1xf32>
    %31 = arith.maximumf %29, %30 : vector<16x1xf32>
    %32 = vector.broadcast %31 : vector<16x1xf32> to vector<16x16xf32>
    %33 = arith.subf %27, %32 : vector<16x16xf32>
    %34 = math.exp %33 : vector<16x16xf32>
    %cst_14 = arith.constant dense<0.000000e+00> : vector<16xf32>
    %35 = vector.multi_reduction <add>, %34, %cst_14 [1] : vector<16x16xf32> to vector<16xf32>
    %36 = vector.shape_cast %35 : vector<16xf32> to vector<16x1xf32>
    %cst_15 = arith.constant 9.99999996E-13 : f32
    %37 = vector.broadcast %cst_15 : f32 to vector<16x1xf32>
    %38 = arith.maximumf %36, %37 : vector<16x1xf32>
    %39 = tpu.reciprocal %38 {approx = true} : vector<16x1xf32> -> vector<16x1xf32>
    %40 = vector.broadcast %39 : vector<16x1xf32> to vector<16x16xf32>
    %41 = arith.mulf %34, %40 : vector<16x16xf32>
    %cst_16 = arith.constant dense<0.000000e+00> : vector<16x8xf32>
    %42 = tpu.matmul %41, %6, %cst_16 {dimension_numbers = #tpu.dot_dimension_numbers<[1], [0], [0], [1], [0, 0, 1, 1], [], []>} : vector<16x16xf32>, vector<16x8xf32>, vector<16x8xf32> -> vector<16x8xf32>
    %c0_17 = arith.constant 0 : index
    %c0_18 = arith.constant 0 : index
    %c0_19 = arith.constant 0 : index
    %43 = vector.load %arg5[%c0_17, %c0_18, %c0_19] : memref<1x8x16xf32, #tpu.memory_space<vmem>>, vector<1x8x16xf32>
    %44 = vector.shape_cast %43 : vector<1x8x16xf32> to vector<8x16xf32>
    %cst_20 = arith.constant 1.000000e+00 : f32
    %45 = vector.broadcast %cst_20 : f32 to vector<8x1xf32>
    %46 = tpu.concatenate %12, %45 in 1 : vector<8x1xf32>, vector<8x1xf32> -> vector<8x2xf32>
    %cst_21 = arith.constant 1.000000e+00 : f32
    %47 = vector.broadcast %cst_21 : f32 to vector<16x1xf32>
    %48 = tpu.concatenate %47, %11 in 1 : vector<16x1xf32>, vector<16x1xf32> -> vector<16x2xf32>
    %cst_22 = arith.constant dense<0.000000e+00> : vector<8x16xf32>
    %49 = tpu.matmul %46, %48, %cst_22 {dimension_numbers = #tpu.dot_dimension_numbers<[1], [1], [0], [0], [0, 0, 1, 0], [], []>} : vector<8x2xf32>, vector<16x2xf32>, vector<8x16xf32> -> vector<8x16xf32>
    %cst_23 = arith.constant 0.000000e+00 : f32
    %50 = vector.broadcast %cst_23 : f32 to vector<8x16xf32>
    %51 = arith.cmpf ogt, %49, %50 : vector<8x16xf32>
    %cst_24 = arith.constant 2.000000e-01 : f32
    %52 = vector.broadcast %cst_24 : f32 to vector<8x16xf32>
    %53 = arith.mulf %52, %49 : vector<8x16xf32>
    %54 = arith.select %51, %49, %53 : vector<8x16xi1>, vector<8x16xf32>
    %55 = arith.addf %54, %44 : vector<8x16xf32>
    %cst_25 = arith.constant dense<0xFF800000> : vector<8xf32>
    %56 = vector.multi_reduction <maximumf>, %55, %cst_25 [1] : vector<8x16xf32> to vector<8xf32>
    %57 = vector.shape_cast %56 : vector<8xf32> to vector<8x1xf32>
    %cst_26 = arith.constant -1.000000e+20 : f32
    %58 = vector.broadcast %cst_26 : f32 to vector<8x1xf32>
    %59 = arith.maximumf %57, %58 : vector<8x1xf32>
    %60 = vector.broadcast %59 : vector<8x1xf32> to vector<8x16xf32>
    %61 = arith.subf %55, %60 : vector<8x16xf32>
    %62 = math.exp %61 : vector<8x16xf32>
    %cst_27 = arith.constant dense<0.000000e+00> : vector<8xf32>
    %63 = vector.multi_reduction <add>, %62, %cst_27 [1] : vector<8x16xf32> to vector<8xf32>
    %64 = vector.shape_cast %63 : vector<8xf32> to vector<8x1xf32>
    %cst_28 = arith.constant 9.99999996E-13 : f32
    %65 = vector.broadcast %cst_28 : f32 to vector<8x1xf32>
    %66 = arith.maximumf %64, %65 : vector<8x1xf32>
    %67 = tpu.reciprocal %66 {approx = true} : vector<8x1xf32> -> vector<8x1xf32>
    %68 = vector.broadcast %67 : vector<8x1xf32> to vector<8x16xf32>
    %69 = arith.mulf %62, %68 : vector<8x16xf32>
    %cst_29 = arith.constant dense<0.000000e+00> : vector<8x8xf32>
    %70 = tpu.matmul %69, %7, %cst_29 {dimension_numbers = #tpu.dot_dimension_numbers<[1], [0], [0], [1], [0, 0, 1, 1], [], []>} : vector<8x16xf32>, vector<16x8xf32>, vector<8x8xf32> -> vector<8x8xf32>
    %c0_30 = arith.constant 0 : index
    %c0_31 = arith.constant 0 : index
    %c0_32 = arith.constant 0 : index
    %71 = vector.load %arg6[%c0_30, %c0_31, %c0_32] : memref<1x16x8xf32, #tpu.memory_space<vmem>>, vector<1x16x8xf32>
    %72 = vector.shape_cast %71 : vector<1x16x8xf32> to vector<16x8xf32>
    %cst_33 = arith.constant 1.000000e+00 : f32
    %73 = vector.broadcast %cst_33 : f32 to vector<16x1xf32>
    %74 = tpu.concatenate %14, %73 in 1 : vector<16x1xf32>, vector<16x1xf32> -> vector<16x2xf32>
    %cst_34 = arith.constant 1.000000e+00 : f32
    %75 = vector.broadcast %cst_34 : f32 to vector<8x1xf32>
    %76 = tpu.concatenate %75, %13 in 1 : vector<8x1xf32>, vector<8x1xf32> -> vector<8x2xf32>
    %cst_35 = arith.constant dense<0.000000e+00> : vector<16x8xf32>
    %77 = tpu.matmul %74, %76, %cst_35 {dimension_numbers = #tpu.dot_dimension_numbers<[1], [1], [0], [0], [0, 0, 1, 0], [], []>} : vector<16x2xf32>, vector<8x2xf32>, vector<16x8xf32> -> vector<16x8xf32>
    %cst_36 = arith.constant 0.000000e+00 : f32
    %78 = vector.broadcast %cst_36 : f32 to vector<16x8xf32>
    %79 = arith.cmpf ogt, %77, %78 : vector<16x8xf32>
    %cst_37 = arith.constant 2.000000e-01 : f32
    %80 = vector.broadcast %cst_37 : f32 to vector<16x8xf32>
    %81 = arith.mulf %80, %77 : vector<16x8xf32>
    %82 = arith.select %79, %77, %81 : vector<16x8xi1>, vector<16x8xf32>
    %83 = arith.addf %82, %72 : vector<16x8xf32>
    %cst_38 = arith.constant dense<0xFF800000> : vector<16xf32>
    %84 = vector.multi_reduction <maximumf>, %83, %cst_38 [1] : vector<16x8xf32> to vector<16xf32>
    %85 = vector.shape_cast %84 : vector<16xf32> to vector<16x1xf32>
    %cst_39 = arith.constant -1.000000e+20 : f32
    %86 = vector.broadcast %cst_39 : f32 to vector<16x1xf32>
    %87 = arith.maximumf %85, %86 : vector<16x1xf32>
    %88 = vector.broadcast %87 : vector<16x1xf32> to vector<16x8xf32>
    %89 = arith.subf %83, %88 : vector<16x8xf32>
    %90 = math.exp %89 : vector<16x8xf32>
    %cst_40 = arith.constant dense<0.000000e+00> : vector<16xf32>
    %91 = vector.multi_reduction <add>, %90, %cst_40 [1] : vector<16x8xf32> to vector<16xf32>
    %92 = vector.shape_cast %91 : vector<16xf32> to vector<16x1xf32>
    %cst_41 = arith.constant 9.99999996E-13 : f32
    %93 = vector.broadcast %cst_41 : f32 to vector<16x1xf32>
    %94 = arith.maximumf %92, %93 : vector<16x1xf32>
    %95 = tpu.reciprocal %94 {approx = true} : vector<16x1xf32> -> vector<16x1xf32>
    %96 = vector.broadcast %95 : vector<16x1xf32> to vector<16x8xf32>
    %97 = arith.mulf %90, %96 : vector<16x8xf32>
    %cst_42 = arith.constant dense<0.000000e+00> : vector<16x8xf32>
    %98 = tpu.matmul %97, %8, %cst_42 {dimension_numbers = #tpu.dot_dimension_numbers<[1], [0], [0], [1], [0, 0, 1, 1], [], []>} : vector<16x8xf32>, vector<8x8xf32>, vector<16x8xf32> -> vector<16x8xf32>
    %99 = arith.addf %42, %98 : vector<16x8xf32>
    %c0_43 = arith.constant 0 : index
    %c0_44 = arith.constant 0 : index
    %100 = vector.load %arg3[%c0_43, %c0_44] : memref<2x8xf32, #tpu.memory_space<vmem>>, vector<1x8xf32>
    %101 = vector.broadcast %100 : vector<1x8xf32> to vector<16x8xf32>
    %102 = arith.addf %99, %101 : vector<16x8xf32>
    %c1 = arith.constant 1 : index
    %c0_45 = arith.constant 0 : index
    %103 = vector.load %arg3[%c1, %c0_45] : memref<2x8xf32, #tpu.memory_space<vmem>>, vector<1x8xf32>
    %104 = vector.broadcast %103 : vector<1x8xf32> to vector<8x8xf32>
    %105 = arith.addf %70, %104 : vector<8x8xf32>
    %cst_46 = arith.constant dense<0xFF800000> : vector<8xf32>
    %106 = vector.multi_reduction <maximumf>, %105, %cst_46 [1] : vector<8x8xf32> to vector<8xf32>
    %107 = vector.shape_cast %106 : vector<8xf32> to vector<8x1xf32>
    %108 = vector.broadcast %107 : vector<8x1xf32> to vector<8x8xf32>
    %109 = arith.subf %105, %108 : vector<8x8xf32>
    %110 = math.exp %109 : vector<8x8xf32>
    %cst_47 = arith.constant dense<0.000000e+00> : vector<8xf32>
    %111 = vector.multi_reduction <add>, %110, %cst_47 [1] : vector<8x8xf32> to vector<8xf32>
    %112 = vector.shape_cast %111 : vector<8xf32> to vector<8x1xf32>
    %113 = tpu.reciprocal %112 {approx = true} : vector<8x1xf32> -> vector<8x1xf32>
    %114 = vector.broadcast %113 : vector<8x1xf32> to vector<8x8xf32>
    %115 = arith.mulf %110, %114 : vector<8x8xf32>
    %c0_48 = arith.constant 0 : index
    %c0_49 = arith.constant 0 : index
    %c0_50 = arith.constant 0 : index
    %116 = vector.load %arg7[%c0_48, %c0_49, %c0_50] : memref<1x24x8xf32, #tpu.memory_space<vmem>>, vector<1x16x8xf32>
    %117 = vector.shape_cast %116 : vector<1x16x8xf32> to vector<16x8xf32>
    %118 = vector.shape_cast %102 : vector<16x8xf32> to vector<1x16x8xf32>
    tpu.vector_store %arg7[%c0_48, %c0_49, %c0_50], %118 {strides = array<i32>} : memref<1x24x8xf32, #tpu.memory_space<vmem>>, vector<1x16x8xf32>,
    %c0_51 = arith.constant 0 : index
    %c16 = arith.constant 16 : index
    %c0_52 = arith.constant 0 : index
    %119 = vector.load %arg7[%c0_51, %c16, %c0_52] : memref<1x24x8xf32, #tpu.memory_space<vmem>>, vector<1x8x8xf32>
    %120 = vector.shape_cast %119 : vector<1x8x8xf32> to vector<8x8xf32>
    %121 = vector.shape_cast %115 : vector<8x8xf32> to vector<1x8x8xf32>
    tpu.vector_store %arg7[%c0_51, %c16, %c0_52], %121 {strides = array<i32>} : memref<1x24x8xf32, #tpu.memory_space<vmem>>, vector<1x8x8xf32>,
    return
  }
  func.func @transform_0(%arg0: i32) -> (i32, i32, i32) {
    %c0_i32 = arith.constant 0 : i32
    %c0_i32_0 = arith.constant 0 : i32
    %c0_i32_1 = arith.constant 0 : i32
    return %arg0, %c0_i32, %c0_i32_0 : i32, i32, i32
  }
  func.func @transform_1(%arg0: i32) -> (i32, i32) {
    %c0_i32 = arith.constant 0 : i32
    %c0_i32_0 = arith.constant 0 : i32
    %c0_i32_1 = arith.constant 0 : i32
    return %c0_i32, %c0_i32_0 : i32, i32
  }
  func.func @transform_2(%arg0: i32) -> (i32, i32) {
    %c0_i32 = arith.constant 0 : i32
    %c0_i32_0 = arith.constant 0 : i32
    %c0_i32_1 = arith.constant 0 : i32
    return %c0_i32, %c0_i32_0 : i32, i32
  }
  func.func @transform_3(%arg0: i32) -> (i32, i32, i32) {
    %c0_i32 = arith.constant 0 : i32
    %c0_i32_0 = arith.constant 0 : i32
    %c0_i32_1 = arith.constant 0 : i32
    return %arg0, %c0_i32, %c0_i32_0 : i32, i32, i32
  }
  func.func @transform_4(%arg0: i32) -> (i32, i32, i32) {
    %c0_i32 = arith.constant 0 : i32
    %c0_i32_0 = arith.constant 0 : i32
    %c0_i32_1 = arith.constant 0 : i32
    return %arg0, %c0_i32, %c0_i32_0 : i32, i32, i32
  }
  func.func @transform_5(%arg0: i32) -> (i32, i32, i32) {
    %c0_i32 = arith.constant 0 : i32
    %c0_i32_0 = arith.constant 0 : i32
    %c0_i32_1 = arith.constant 0 : i32
    return %arg0, %c0_i32, %c0_i32_0 : i32, i32, i32
  }
  func.func @transform_6(%arg0: i32) -> (i32, i32, i32) {
    %c0_i32 = arith.constant 0 : i32
    %c0_i32_0 = arith.constant 0 : i32
    %c0_i32_1 = arith.constant 0 : i32
    return %arg0, %c0_i32, %c0_i32_0 : i32, i32, i32
  }
}

</mosaic_0001>

<bundles_post_ra>
// kernel: agcn_batched.1
= control target key start
LH: loop header
LB: loop body
LE: loop exit
PB: predicated region body
PF: predicated region fallthrough
CT: control target
= control target key end

     0   :  { %11 = vsyncpa [#allocation3], 0  ;;  %s1781_s0 = inlined_call_operand.vmem [shape: bf16[2,24,32], index: 0, kind: input, shape index: {}]   ;;  %s1782_s1 = inlined_call_operand.hbm [shape: bf16[32,32], index: 1, kind: input, shape index: {}]   ;;  %s1783_s2 = inlined_call_operand.vmem [shape: f32[2,8], index: 2, kind: input, shape index: {}]   ;;  %s1784_s3 = inlined_call_operand.vmem [shape: f32[2,16,16], index: 3, kind: input, shape index: {}]   ;;  %s1785_s4 = inlined_call_operand.hbm [shape: f32[2,8,16], index: 4, kind: input, shape index: {}]   ;;  %s1786_s5 = inlined_call_operand.vmem [shape: f32[2,16,8], index: 5, kind: input, shape index: {}]   ;;  %s1787_s6 = inlined_call_operand.vmem [shape: f32[2,24,8], index: 6, kind: output, shape index: {}]  }
   0x1   :  { %12 = vsyncpa [#allocation5], 0 }
   0x2   :  { %14 = vsyncpa [#allocation5 + $0x1], 0  ;;  %s1568_s21 = smov 0   ;;  %s1570_s22 = smov 0  }
   0x3   :  { %s1572_s23 = smov 0   ;;  %s1574_s24 = smov 0  }
   0x4 LB: > { %s1587_s25 = sadd.s32 4294967295, %s1518_s24   ;;  %p134_p0 = scmp.ne.s32.totalorder %s1510_s22, %s1506_s21  ;;  %s1518_s24 = sphi %s1574_s24, %s1802_s24   ;;  %s1514_s23 = sphi %s1572_s23, %s1801_s23   ;;  %s1510_s22 = sphi %s1570_s22, %s1800_s22   ;;  %s1506_s21 = sphi %s1568_s21, %s1799_s21  }
   0x5   : > { %p1788_p1 = scmp.eq.s32.totalorder %s1587_s25, 0  ;;  %p1191_p2 = scmp.ge.s32.totalorder %s1518_s24, 1 }
   0x6   : > { %p197_p3 = scmp.lt.s32.totalorder %s1518_s24, 3  ;;  %s1520_s28 = smov [#allocation2]  }
   0x7   : > { %p1595_p4 = por %p1788_p1, %p134_p0  ;;  %s209_s29 = sshll.u32 %s1520_s28, 4  ;;  %s210_s29 = int_to_ptr.vmem [resolvable:$true] %s209_s29 }
   0x8   : > { %p1599_p5 = pnand %p1191_p2, %p197_p3  ;;  %s1612_s7 = sadd.s32 1, %s1518_s24  }
   0x9   : > { %s1791_s26 = scalar_select %p1595_p4, 1, 0 }
   0xa   : > { %s1792_s27 = scalar_select %p1599_p5, 1, 0 }
   0xb   : > { %p1329_p6 = pneg %p1599_p5  ;;  %s121_s8 = sadd.s32 1, %s1514_s23 }
   0xc   : > { %s118_s9 = ssub.s32 %s1518_s24, %s1612_s7  ;;  %s1422_s12 = scalar_lea.hbm %s1782_s1, 256 }
   0xd   : > { %p1607_p7 = pnand %p1329_p6, %p1788_p1  ;;  %p1423_p8 = scmp.ne.s32.totalorder %s1782_s1, %s1422_s12 }
   0xe   : > { %p1429_p12 = scmp.lt.u32.totalorder %s1422_s12, %s1782_s1 }
   0xf   : > { %p1424_p9 = pneg %p1607_p7 }
  0x11   : > { %p1425_p10 = pnand %p1424_p9, %p1423_p8 }
  0x13   : > { %p1426_p11 = pneg %p1425_p10 }
  0x15   : > { %p1431_p13 = pnand %p1429_p12, %p1426_p11 }
  0x17   : > { %1434 = shalt.err (!%p1431_p13)
}
  0x18   : > { %s1435_s17 = scalar_lea.vmem %s210_s29, 256  ;;  %p1443_p6 = scmp.lt.s32.totalorder %s210_s29, %s210_s29 }
  0x19   : > { %p1436_p0 = scmp.ne.s32.totalorder %s210_s29, %s1435_s17  ;;  %p1444_p1 = scmp.lt.s32.totalorder %s1435_s17, %s1435_s17 }
  0x1b   : > { %p1438_p2 = pnand %p1436_p0, %p1424_p9  ;;  %p1445_p4 = por %p1444_p1, %p1443_p6 }
  0x1d   : > { %p1439_p3 = pneg %p1438_p2 }
  0x1f   : > { %p1446_p5 = pnand %p1445_p4, %p1439_p3 }
  0x21   : > { %1449 = shalt.err (!%p1446_p5)
}
  0x22   : > { %s1521_s18 = smov 64   ;;  %s1522_s19 = smov 4  }
  0x23   : > { %1332 = dma.hbm_to_vmem [thread:$0]  (!%p1607_p7), %s1782_s1, 256, %s210_s29, [#allocation3], %s1521_s18, %s1521_s18, %s1522_s19  }
  0x24   : > { %p119_p8 = scmp.eq.s32.totalorder %s118_s9, 0  ;;  %p128_p9 = scmp.ne.s32.totalorder %s1514_s23, %s1510_s22 }
  0x25   : > { %p129_p1 = scmp.eq.s32.totalorder %s1518_s24, 0  ;;  %p1338_p4 = scmp.lt.s32.totalorder %s1518_s24, 2 }
  0x26   : > { %s1638_s28 = scalar_select %p119_p8, %s1514_s23, %s121_s8  }
  0x27   : > { %p130_p5 = por %p129_p1, %p128_p9  ;;  %s242_s10 = sand.u32 1, %s1514_s23  }
  0x28   : > { %s1194_s11 = sshll.u32 %s242_s10, 3  ;;  %s1195_s12 = sshll.u32 %s1518_s24, 7 }
  0x29   : > { %s1645_s15 = scalar_lea.hbm %s1785_s4, %s1195_s12  ;;  %s246_s29 = scalar_lea.vmem [#allocation4], %s1194_s11 }
  0x2a   : > { %s253_s30 = sshll.u32 %s246_s29, 4  ;;  %p1649_p7 = pnand %p1338_p4, %p130_p5  ;;  %s1647_s30 = int_to_ptr.vmem [resolvable:$true] %s253_s30 }
  0x2b   : > { %s243_s24 = scalar_lea.sflag [#allocation5], %s242_s10  ;;  %s1450_s9 = scalar_lea.hbm %s1645_s15, 128 }
  0x2c   : > { %p1451_p10 = scmp.ne.s32.totalorder %s1645_s15, %s1450_s9  ;;  %p1452_p11 = pneg %p1649_p7 }
  0x2d   : > { %s1455_s18 = scalar_lea.hbm %s1785_s4, 256  ;;  %p1456_p0 = scmp.lt.u32.totalorder %s1645_s15, %s1785_s4 }
  0x2e   : > { %p1453_p12 = pnand %p1452_p11, %p1451_p10  ;;  %p1457_p2 = scmp.lt.u32.totalorder %s1455_s18, %s1450_s9 }
  0x2f   : > { %p1459_p6 = scmp.lt.u32.totalorder %s1450_s9, %s1645_s15 }
  0x30   : > { %p1454_p13 = pneg %p1453_p12  ;;  %p1458_p3 = por %p1457_p2, %p1456_p0 }
  0x32   : > { %p1460_p8 = por %p1459_p6, %p1458_p3 }
  0x34   : > { %p1461_p9 = pnand %p1460_p8, %p1454_p13 }
  0x36   : > { %1464 = shalt.err (!%p1461_p9)
}
  0x37   : > { %s1465_s21 = scalar_lea.vmem %s1647_s30, 128  ;;  %s1523_s10 = smov [#allocation4]  }
  0x38   : > { %p1466_p1 = scmp.ne.s32.totalorder %s1647_s30, %s1465_s21  ;;  %s1470_s11 = sshll.u32 %s1523_s10, 4  ;;  %s1471_s11 = int_to_ptr.vmem [resolvable:$false] %s1470_s11 }
  0x39   : > { %s1472_s12 = scalar_lea.vmem %s1471_s11, 256  ;;  %p1473_p10 = scmp.lt.s32.totalorder %s1647_s30, %s1471_s11 }
  0x3a   : > { %p1468_p4 = pnand %p1466_p1, %p1452_p11  ;;  %p1474_p12 = scmp.lt.s32.totalorder %s1472_s12, %s1465_s21 }
  0x3c   : > { %p1469_p5 = pneg %p1468_p4  ;;  %p1475_p0 = por %p1474_p12, %p1473_p10 }
  0x3e   : > { %p1476_p2 = pnand %p1475_p0, %p1469_p5 }
  0x40   : > { %1479 = shalt.err (!%p1476_p2)
}
  0x41   : > { %1336 = dma.hbm_to_vmem [thread:$0]  (!%p1649_p7), %s1645_s15, 128, %s1647_s30, %s243_s24  }
  0x42   : > { %p1795_p13 = scmp.ne.s32.totalorder %s1792_s27, 0 }
  0x43   : > { %p1796_p11 = scmp.eq.s32.totalorder (!%p1795_p13), %s1587_s25, 0 }
  0x44   : > { %270 = sbr.rel (%p1795_p13) target bundleno = 1495 (0x5d7), region = 44 }
  0x4b   : > { %1497 = dma.done.wait (%p1796_p11), [#allocation3], 256   ;;  %p1797_p3 = pmov %p1796_p11 }
  0x4c   : > { %s276_s13 = sand.u32 1, %s1510_s22   ;;  %p1798_p6 = scmp.ne.s32.totalorder %s1791_s26, 0 }
  0x4d   : > { %1499 = vsyncadd (%p1797_p3), [#allocation3], 4294967040  ;;  %s1685_s14 = sshll.u32 %s276_s13, 3  ;;  %s277_s29 = scalar_lea.sflag [#allocation5], %s276_s13 }
  0x4e   : > { %s280_s8 = scalar_lea.vmem [#allocation4], %s1685_s14 }
  0x4f   : > { %1501 = dma.done.wait (%p1798_p6), %s277_s29, 128  }
  0x50   : > { %1503 = vsyncadd (%p1798_p6), %s277_s29, 4294967168  ;;  %p324_p7 = scmp.lt.s32.totalorder %s1587_s25, 1  ;;  %v1394_v0 = vld [vmem:[#allocation2] sm:$0xff]   ;;  %v1395_v1 = vld [vmem:[#allocation2 + $0x8] sm:$0xff]   ;;  %vm372_vm0 = vcmask 261120   ;;  %v1524_v4 = vmov 0.0|0.0  }
  0x51   : > { %1256 = vmatprep.subr.bf16.mxu0 %v1394_v0  ;;  %s1525_s26 = smov 101   ;;  %vm1526_vm1 = vmmov 0   ;;  %v1527_v7 = vmov 0.0   ;;  %s1528_s9 = smov 103   ;;  %vm437_vm2 = vcmask 7168   ;;  %vm448_vm3 = vcmask 15360  }
  0x52   : > { %s1804_s25 = smov (!%p324_p7, %s1587_s25), 1  ;;  %1257 = vmatpush3.bf16.msra.mxu0 %v1394_v0  ;;  %s1529_s16 = smov 105   ;;  %vm1303_vm4 = vmpackc.low %vm448_vm3, %vm448_vm3  ;;  %v571_v35 = vld [vmem:[%s280_s8] sm:$0xff]  ;;  %vm544_vm6 = vcmask 130048   ;;  %vm778_vm9 = vcmask 64512  }
  0x53   : > { %s1321_s27 = smul.u32 12, %s1804_s25  ;;  %1258 = vmatprep.subr.bf16.mxu0 %v1395_v1  ;;  %s1530_s17 = smov 99  }
  0x54   : > { %s1531_s18 = smov 120   ;;  %s1230_s19 = sshll.u32 %s1804_s25, 4 }
  0x55   : > { %s328_s24 = scalar_lea.vmem %s1781_s0, %s1321_s27  ;;  %s338_s10 = scalar_lea.vmem %s1786_s5, %s1230_s19 }
  0x56   : > { %v1396_v2 = vld [vmem:[%s328_s24] sm:$0xff]   ;;  %v1397_v3 = vld [vmem:[%s328_s24 + $0x8] ss:$0 sps:$4 sm:$0xff]   ;;  %1259 = vmatpush3.bf16.msra.mxu0 %v1395_v1  ;;  %s333_s13 = scalar_lea.vmem %s1784_s3, %s1230_s19  ;;  %s1532_s14 = smov 112  }
  0x57   : > { %1260 = vmatprep.mubr.msk.bf16.mxu0 %vm372_vm0, %v1396_v2  ;;  %1308 = vmatprep.subr.bf16.mxu0 %v1524_v4  ;;  %v675_v53 = vld [vmem:[%s338_s10] sm:$0xff]  ;;  %v676_v59 = vld [vmem:[%s338_s10 + $0x8] sm:$0xff]  ;;  %s1322_s27 = smul.u32 24, %s1804_s25 }
  0x58   : > { %v427_v0 = vld [vmem:[%s333_s13] sm:$0xff] }
  0x59   : > { %1261 = vmatmul.mubr.msk.bf16.vlgmr.msra.gmra.mrb[0].mxu0 %vm372_vm0, %v1397_v3 }
  0x5a   : > { %1275 = vmatprep.mubr.msk.f32.mxu0 %vm1526_vm1, %v1527_v7 }
 0x12c   : > { %v1700_v5 = vpop.f32.mrb[0].mxu0 }
 0x12d   : > { %573 = vrot.lane.b32.xlu1 %v1700_v5, %s1525_s26  ;;  %v413_v6 = vpop.f32.mrb[1].mxu0 }
 0x12e   : > { %431 = vrot.lane.b32.xlu0 %v413_v6, %s1528_s9  ;;  %v1263_v8 = vpop.f32.mrb[2].mxu0 }
 0x12f   : > { %v416_v9 = vpop.f32.mrb[3].mxu0 }
 0x130   : > { %v1384_v10 = vpack.i.bf16 %v416_v9, %v413_v6  ;;  %v1704_v11 = vpack.c.bf16 %v416_v9, %v413_v6 }
 0x132   : > { %1385 = vrot.lane.b32.xlu1 %v1384_v10, %s1529_s16  ;;  %433 = vrot.lane.b32.xlu0 %v416_v9, %s1528_s9  ;;  %s343_s9 = scalar_lea.vmem %s1787_s6, %s1322_s27 }
 0x136   : > { %679 = vrot.lane.b32.xlu1 %v416_v9, %s1530_s17  ;;  %677 = vrot.lane.b32.xlu0 %v413_v6, %s1530_s17 }
 0x19f   : > { %v574_v12 = vpop.permute.xlu1 %573 }
 0x1a0   : > { %v432_v13 = vpop.permute.xlu0 %431  ;;  %v685_v25 = vsel %vm437_vm2, 1.0, %v574_v12  ;;  %v576_v26 = vsel %vm437_vm2, %v574_v12, 1.0 }
 0x1a1   : > { %v438_v14 = vsel %vm437_vm2, %v432_v13, 1.0  ;;  %v577_v17 = vsel %vm437_vm2, 1.0, %v432_v13 }
 0x1a2   : > { %1268 = vmatprep.mubr.msk.f32.mxu1 %vm448_vm3, %v438_v14 }
 0x1a4   : > { %v1386_v15 = vpop.permute.xlu1 %1385  ;;  %v434_v16 = vpop.permute.xlu0 %433 }
 0x1a5   : > { %v1388_v18 = vunpack.i.h.bf16 %v1386_v15  ;;  %v1387_v19 = vunpack.i.l.bf16 %v1386_v15  ;;  %v578_v20 = vsel %vm437_vm2, 1.0, %v434_v16  ;;  %v439_v28 = vsel %vm437_vm2, %v434_v16, 1.0 }
 0x1a6   : > { %v1309_v21 = vpack.c.bf16 %v578_v20, %v577_v17 }
 0x1a7   : > { %v446_v22 = vsel %vm437_vm2, 1.0, %v1387_v19  ;;  %v447_v23 = vsel %vm437_vm2, 1.0, %v1388_v18 }
 0x1a8   : > { %1311 = vmatpush3.bf16.xpose.msk.msra.mxu0 %vm1303_vm4, %v1309_v21  ;;  %v1302_v24 = vpack.c.bf16 %v447_v23, %v446_v22  ;;  %v678_v27 = vpop.permute.xlu0 %677  ;;  %v680_v29 = vpop.permute.xlu1 %679 }
 0x1a9   : > { %1316 = vmatprep.subr.bf16.mxu0 %v1524_v4  ;;  %v683_v30 = vsel %vm437_vm2, %v678_v27, 1.0  ;;  %v684_v31 = vsel %vm437_vm2, %v680_v29, 1.0  ;;  %v428_v4 = vld [vmem:[%s333_s13 + $0x8] sm:$0xff] }
 0x1aa   : > { %1304 = vmatprep.subr.msk.bf16.mxu1 %vm1303_vm4, %v1302_v24 }
 0x1ab   : > { %1307 = vmatpush3.bf16.xpose.msk.msra.mxu1 %vm1303_vm4, %v1302_v24 }
 0x1ac   : > { %1278 = vmatprep.subr.msk.mxu1 %vm448_vm3, %v685_v25 }
 0x1af   : > { %1276 = vmatmul.mubr.msk.f32.vlgmr.msra.gmra.mrb[4].mxu0 %vm448_vm3, %v576_v26 }
 0x1b0   : > { %1299 = vmatprep.mubr.msk.f32.mxu0 %vm1526_vm1, %v1527_v7 }
 0x1b2   : > { %1269 = vmatmul.mubr.msk.f32.vlgmr.msra.gmra.mrb[0].mxu1 %vm448_vm3, %v439_v28 }
 0x1b3   : > { %1279 = vmatpush3.xpose.msk.msra.mxu1 %vm448_vm3, %v685_v25  ;;  %1280 = vmatprep.mubr.msk.f32.mxu1 %vm448_vm3, %v683_v30 }
 0x1b6   : > { %1281 = vmatmul.mubr.msk.f32.vlgmr.msra.gmra.mrb[2].mxu1 %vm448_vm3, %v684_v31 }
 0x282   : > { %v654_v32 = vpop.f32.mrb[4].mxu0 }
 0x283   : > { %vm658_vm5 = vcmp.gt.f32.partialorder %v654_v32, 0.0  ;;  %v659_v33 = vmul.f32 0.2, %v654_v32  ;;  %v1277_v34 = vpop.f32.mrb[5].mxu0 }
 0x285   : > { %v1270_v36 = vpop.f32.mrb[0].mxu1  ;;  %v660_v37 = vsel %vm658_vm5, %v654_v32, %v659_v33 }
 0x286   : > { %v527_v38 = vpop.f32.mrb[1].mxu1  ;;  %v661_v39 = vadd.f32 %v660_v37, %v571_v35  ;;  %v539_v63 = vmul.f32 0.2, %v1270_v36  ;;  %vm537_vm11 = vcmp.gt.f32.partialorder %v1270_v36, 0.0 }
 0x287   : > { %v538_v58 = vmul.f32 0.2, %v527_v38  ;;  %vm536_vm10 = vcmp.gt.f32.partialorder %v527_v38, 0.0 }
 0x288   : > { %v662_v40 = vsel %vm544_vm6, %v661_v39, -inf  ;;  %v541_v6 = vsel %vm537_vm11, %v1270_v36, %v539_v63 }
 0x289   : > { %663 = vmax.xlane.f32.xlu0 %v662_v40  ;;  %v1282_v41 = vpop.f32.mrb[2].mxu1  ;;  %v540_v1 = vsel %vm536_vm10, %v527_v38, %v538_v58  ;;  %v543_v8 = vadd.f32 %v541_v6, %v428_v4 }
 0x28a   : > { %v761_v42 = vpop.f32.mrb[3].mxu1  ;;  %v773_v52 = vmul.f32 0.2, %v1282_v41  ;;  %vm771_vm8 = vcmp.gt.f32.partialorder %v1282_v41, 0.0  ;;  %v542_v3 = vadd.f32 %v540_v1, %v427_v0  ;;  %v1225_v0 = vld [vmem:[%s1783_s2] ss:$0 sm:$0xff] }
 0x28b   : > { %v772_v51 = vmul.f32 0.2, %v761_v42  ;;  %vm770_vm7 = vcmp.gt.f32.partialorder %v761_v42, 0.0  ;;  %v548_v9 = vsel %vm544_vm6, %v543_v8, -inf }
 0x28c   : > { %v775_v60 = vsel %vm771_vm8, %v1282_v41, %v773_v52  ;;  %v545_v7 = vsel %vm544_vm6, %v542_v3, -inf }
 0x28d   : > { %v774_v54 = vsel %vm770_vm7, %v761_v42, %v772_v51  ;;  %v777_v62 = vadd.f32 %v775_v60, %v676_v59 }
 0x28e   : > { %v776_v57 = vadd.f32 %v774_v54, %v675_v53 }
 0x28f   : > { %v782_v2 = vsel %vm778_vm9, %v777_v62, -inf }
 0x290   : > { %v779_v61 = vsel %vm778_vm9, %v776_v57, -inf }
 0x29f   : > { %1390 = vrot.lane.b32.xlu0 %v1384_v10, %s1531_s18 }
 0x316   : > { %v664_v43 = vpop.xlane.xlu0 %663 }
 0x317   : > { %v665_v44 = vmax.f32 %v664_v43, -1e+20 }
 0x319   : > { %v666_v45 = vsub.f32 %v661_v39, %v665_v44 }
 0x31a   : > { %v1391_v46 = vpop.permute.xlu0 %1390 }
 0x31b   : > { %v667_v47 = vmul.f32 1.442695, %v666_v45  ;;  %v1393_v48 = vunpack.i.h.bf16 %v1391_v46  ;;  %v1392_v49 = vunpack.i.l.bf16 %v1391_v46 }
 0x31d   : > { %1398 = vpow2.f32 %v667_v47  ;;  %v1317_v50 = vpack.c.bf16 %v1393_v48, %v1392_v49 }
 0x31f   : > { %1318 = vmatpush3.bf16.msra.mxu0 %v1317_v50 }
 0x327   : > { %v1399_v55 = vpop.eup %1398 }
 0x328   : > { %v669_v56 = vsel %vm544_vm6, %v1399_v55, 0.0 }
 0x329   : > { %670 = vadd.xlane.f32.xlu1 %v669_v56 }
 0x32d   : > { %780 = vmax.xlane.f32.xlu1 %v779_v61 }
 0x331   : > { %783 = vmax.xlane.f32.xlu1 %v782_v2 }
 0x335   : > { %546 = vmax.xlane.f32.xlu1 %v545_v7 }
 0x339   : > { %549 = vmax.xlane.f32.xlu1 %v548_v9 }
 0x3b6   : > { %v671_v10 = vpop.xlane.xlu1 %670 }
 0x3b7   : > { %v672_v12 = vmax.f32 %v671_v10, 1e-12 }
 0x3b9   : > { %1400 = vrcp.f32 %v672_v12 }
 0x3ba   : > { %v781_v13 = vpop.xlane.xlu1 %780 }
 0x3bb   : > { %v785_v19 = vmax.f32 %v781_v13, -1e+20 }
 0x3bd   : > { %v787_v25 = vsub.f32 %v776_v57, %v785_v19 }
 0x3be   : > { %v784_v14 = vpop.xlane.xlu1 %783 }
 0x3bf   : > { %v786_v15 = vmax.f32 %v784_v14, -1e+20  ;;  %v789_v29 = vmul.f32 1.442695, %v787_v25 }
 0x3c1   : > { %v788_v16 = vsub.f32 %v777_v62, %v786_v15 }
 0x3c2   : > { %v547_v17 = vpop.xlane.xlu1 %546 }
 0x3c3   : > { %v1401_v18 = vpop.eup %1400  ;;  %v791_v20 = vmul.f32 1.442695, %v788_v16  ;;  %v551_v21 = vmax.f32 %v547_v17, -1e+20 }
 0x3c4   : > { %v674_v22 = vmul.f32 %v1401_v18, %v1399_v55  ;;  %v1226_v55 = vld [vmem:[%s1783_s2 + $0x1] ss:$0 sm:$0xff] }
 0x3c5   : > { %1402 = vpow2.f32 %v791_v20  ;;  %v553_v23 = vsub.f32 %v542_v3, %v551_v21 }
 0x3c6   : > { %v550_v24 = vpop.xlane.xlu1 %549  ;;  %1300 = vmatmul.mubr.msk.f32.vlgmr.msra.gmra.mrb[6].mxu0 %vm544_vm6, %v674_v22 }
 0x3c7   : > { %v555_v26 = vmul.f32 1.442695, %v553_v23  ;;  %v552_v27 = vmax.f32 %v550_v24, -1e+20 }
 0x3c9   : > { %1404 = vpow2.f32 %v555_v26  ;;  %v554_v28 = vsub.f32 %v543_v8, %v552_v27 }
 0x3cb   : > { %v557_v30 = vmul.f32 1.442695, %v554_v28 }
 0x3cd   : > { %1406 = vpow2.f32 %v557_v30 }
 0x3ce   : > { %1408 = vpow2.f32 %v789_v29 }
 0x3cf   : > { %v1403_v31 = vpop.eup %1402 }
 0x3d0   : > { %v796_v32 = vsel %vm778_vm9, %v1403_v31, 0.0 }
 0x3d1   : > { %797 = vadd.xlane.f32.xlu0 %v796_v32 }
 0x3d3   : > { %v1405_v33 = vpop.eup %1404 }
 0x3d4   : > { %v559_v34 = vsel %vm544_vm6, %v1405_v33, 0.0 }
 0x3d5   : > { %560 = vadd.xlane.f32.xlu1 %v559_v34 }
 0x3d7   : > { %v1407_v35 = vpop.eup %1406 }
 0x3d8   : > { %v562_v36 = vsel %vm544_vm6, %v1407_v35, 0.0  ;;  %v1409_v37 = vpop.eup %1408 }
 0x3d9   : > { %563 = vadd.xlane.f32.xlu1 %v562_v36  ;;  %v793_v38 = vsel %vm778_vm9, %v1409_v37, 0.0 }
 0x3dd   : > { %794 = vadd.xlane.f32.xlu1 %v793_v38 }
 0x3ee   : > { %805 = vrot.lane.b32.xlu1 %v1700_v5, %s1532_s14 }
 0x45e   : > { %v798_v40 = vpop.xlane.xlu0 %797 }
 0x45f   : > { %v800_v42 = vmax.f32 %v798_v40, 1e-12 }
 0x461   : > { %1410 = vrcp.f32 %v800_v42 }
 0x462   : > { %v561_v39 = vpop.xlane.xlu1 %560 }
 0x463   : > { %v565_v43 = vmax.f32 %v561_v39, 1e-12 }
 0x465   : > { %1412 = vrcp.f32 %v565_v43 }
 0x466   : > { %v564_v41 = vpop.xlane.xlu1 %563 }
 0x467   : > { %v566_v47 = vmax.f32 %v564_v41, 1e-12 }
 0x46a   : > { %v795_v44 = vpop.xlane.xlu1 %794 }
 0x46b   : > { %v799_v45 = vmax.f32 %v795_v44, 1e-12  ;;  %v1411_v48 = vpop.eup %1410 }
 0x46c   : > { %v804_v51 = vmul.f32 %v1411_v48, %v1403_v31 }
 0x46d   : > { %1414 = vrcp.f32 %v799_v45 }
 0x46e   : > { %v806_v46 = vpop.permute.xlu1 %805  ;;  %1416 = vrcp.f32 %v566_v47 }
 0x46f   : > { %1283 = vmatprep.subr.mxu1 %v806_v46  ;;  %v1413_v49 = vpop.eup %1412 }
 0x470   : > { %1284 = vmatpush3.msra.mxu1 %v806_v46  ;;  %v569_v52 = vmul.f32 %v1413_v49, %v1405_v33 }
 0x471   : > { %1313 = vmatprep.subr.bf16.mxu1 %v1704_v11 }
 0x477   : > { %v1415_v5 = vpop.eup %1414 }
 0x478   : > { %v803_v50 = vmul.f32 %v1415_v5, %v1409_v37  ;;  %v1417_v53 = vpop.eup %1416 }
 0x479   : > { %v570_v54 = vmul.f32 %v1417_v53, %v1407_v35 }
 0x47a   : > { %1285 = vmatprep.mubr.msk.f32.mxu1 %vm778_vm9, %v803_v50 }
 0x47b   : > { %1286 = vmatmul.mubr.msk.f32.vlgmr.msra.gmra.mrb[4].mxu1 %vm778_vm9, %v804_v51 }
 0x47c   : > { %1315 = vmatpush3.bf16.msra.mxu1 %v1704_v11  ;;  %1292 = vmatprep.mubr.msk.f32.mxu1 %vm544_vm6, %v569_v52 }
 0x483   : > { %1293 = vmatmul.mubr.msk.f32.vlgmr.msra.gmra.mrb[4].mxu1 %vm544_vm6, %v570_v54 }
 0x499   : > { %v1057_v56 = vpop.f32.mrb[6].mxu0 }
 0x49a   : > { %v1058_v57 = vadd.f32 %v1226_v55, %v1057_v56  ;;  %v1301_v58 = vpop.f32.mrb[7].mxu0 }
 0x49c   : > { %v1061_v59 = vsel %vm778_vm9, %v1058_v57, -inf }
 0x49d   : > { %1062 = vmax.xlane.f32.xlu1 %v1061_v59 }
 0x52a   : > { %v1063_v60 = vpop.xlane.xlu1 %1062 }
 0x52b   : > { %v1064_v61 = vsub.f32 %v1058_v57, %v1063_v60 }
 0x52d   : > { %v1065_v11 = vmul.f32 1.442695, %v1064_v61 }
 0x52f   : > { %1418 = vpow2.f32 %v1065_v11 }
 0x539   : > { %v1419_v62 = vpop.eup %1418 }
 0x53a   : > { %v1067_v63 = vsel %vm778_vm9, %v1419_v62, 0.0 }
 0x53b   : > { %1068 = vadd.xlane.f32.xlu0 %v1067_v63 }
 0x556   : > { %v1294_v1 = vpop.f32.mrb[4].mxu1 }
 0x557   : > { %v976_v2 = vadd.f32 %v1294_v1, %v1225_v0  ;;  %v961_v3 = vpop.f32.mrb[5].mxu1 }
 0x558   : > { %v975_v4 = vadd.f32 %v1225_v0, %v961_v3 }
 0x559   : > { %1073 = vst.msk [vmem:[%s343_s9 + $0x8] sm:$0xff] %vm778_vm9, %v976_v2 }
 0x55a   : > { %1072 = vst.msk [vmem:[%s343_s9] sm:$0xff] %vm778_vm9, %v975_v4 }
 0x5c8   : > { %v1069_v6 = vpop.xlane.xlu0 %1068 }
 0x5c9   : > { %1420 = vrcp.f32 %v1069_v6 }
 0x5d3   : > { %v1421_v7 = vpop.eup %1420 }
 0x5d4   : > { %v1071_v8 = vmul.f32 %v1421_v7, %v1419_v62 }
 0x5d6   : > { %1074 = vst.msk [vmem:[%s343_s9 + $0x10] sm:$0xff] %vm778_vm9, %v1071_v8 }
 0x5d7 PF: > { %p17_p8 = scmp.ge.s32.totalorder %s1612_s7, 4   ;;  %s1799_s21 = smov %s1510_s22 }
 0x5d8   : > { %s1800_s22 = smov %s1514_s23  ;;  %s1801_s23 = smov %s1638_s28 }
 0x5d9   : > { %s1802_s24 = smov %s1612_s7  ;;  %19 = sbr.rel (!%p17_p8) target bundleno = 4 (0x4), region = 98 }
 0x5e0   :  { %1096 = vsyncpa [#allocation3], 1 }
 0x5e1   :  { %1098 = vsyncpa [#allocation3 + $0x1], 1 }
 0x5e2   :  { %1099 = vsyncpa [#allocation5], 1 }
 0x5e3   :  { %1101 = vsyncpa [#allocation5 + $0x1], 1 }

</bundles_post_ra>
